<compile_context>
chip_gen: v6e
topology: v6e:2x2x1
jax: 0.10.0
libtpu: 0.0.40
codegen_flags: <defaults>
</compile_context>

<pallas_src>
import functools
import numpy as np

import jax
import jax.numpy as jnp
from jax import lax
from jax.experimental import pallas as pl
from jax.experimental.pallas import tpu as pltpu


# Degree-12 Taylor scaling threshold (see header comment for why not 3.9).
_THETA_12 = 2.0


# ---------------------------------------------------------------------------
# Fused kernel:
#   step 0      : W = expm(2^s * a)  (Paterson-Stockmeyer degree-12 Taylor
#                 + s runtime squarings) -> persistent VMEM scratch
#   every step  : out_tile = x_tile @ W + bias
# ---------------------------------------------------------------------------
def _son_linear_kernel(s_ref, a_ref, bias_ref, x_ref, out_ref, w_ref):
    n = a_ref.shape[0]

    @pl.when(pl.program_id(0) == 0)
    def _compute_w():
        dot = functools.partial(jnp.dot, preferred_element_type=jnp.float32)

        a = a_ref[...]                       # pre-scaled skew, ||a||_1 <= theta
        rows = lax.broadcasted_iota(jnp.int32, (n, n), 0)
        cols = lax.broadcasted_iota(jnp.int32, (n, n), 1)
        diag = rows == cols

        a2 = dot(a, a)
        a3 = dot(a2, a)
        a4 = dot(a2, a2)

        # Degree-12 Taylor via Paterson-Stockmeyer (5 matmuls total).
        # Identity coefficients folded in as diagonal adds (no eye temps).
        b2 = (a * (1.0 / 362880.0) + a2 * (1.0 / 3628800.0)
              + a3 * (1.0 / 39916800.0) + a4 * (1.0 / 479001600.0))
        b2 = jnp.where(diag, b2 + (1.0 / 40320.0), b2)

        b1 = a * (1.0 / 120.0) + a2 * (1.0 / 720.0) + a3 * (1.0 / 5040.0)
        b1 = jnp.where(diag, b1 + (1.0 / 24.0), b1) + dot(a4, b2)

        b0 = a + a2 * 0.5 + a3 * (1.0 / 6.0)
        b0 = jnp.where(diag, b0 + 1.0, b0)

        w_ref[...] = b0 + dot(a4, b1)        # exp(a), ||a||_1 <= theta

        # Undo the 2^-s scaling with s repeated squarings (runtime scalar).
        @pl.loop(0, s_ref[0])
        def _square(_):
            w_ref[...] = dot(w_ref[...], w_ref[...])

    out_ref[...] = (jnp.dot(x_ref[...], w_ref[...],
                            preferred_element_type=jnp.float32)
                    + bias_ref[...])


def _pick_batch_tile(B, n, target_bytes=4 << 20):
    """Batch tile rows from a VMEM byte budget (multiple of 8, or == B)."""
    if B <= 8:
        return B
    rows = max(8, target_bytes // (4 * n))
    rows = min(rows, B)
    rows = max((rows // 8) * 8, 8)
    return rows


# ---------------------------------------------------------------------------
# Wrapper
# ---------------------------------------------------------------------------
@jax.jit
def son_linear(x, mat, bias):
    """x: (B, N) f32, mat: (N, N) f32 raw parameter, bias: (1, N) f32."""
    B, n = x.shape
    assert mat.shape == (n, n) and bias.shape == (1, n)

    # Skew matrix + data-dependent scaling (traced -> jittable, per call).
    upper = jnp.triu(mat)
    skew = upper - upper.T
    norm1 = jnp.max(jnp.sum(jnp.abs(skew), axis=0))
    norm1 = jnp.maximum(norm1, jnp.float32(2.0 ** -20))
    # s squarings so that ||2^-s * skew||_1 <= theta.  Clip at 60: beyond that
    # the parameter range is degenerate and the result would be meaningless.
    s_f = jnp.clip(jnp.ceil(jnp.log2(norm1 / _THETA_12)), 0.0, 60.0)
    s = s_f.astype(jnp.int32).reshape(1)                 # scalar prefetch (SMEM)
    a_scaled = (skew * jnp.exp2(-s_f)).astype(jnp.float32)

    tb = _pick_batch_tile(B, n)
    grid = (pl.cdiv(B, tb),)

    # VMEM budget: double-buffered x/out tiles + a_scaled + W scratch + expm
    # temporaries.  Cap at 64 MiB so the same choice is valid on v7x.
    vmem_need = 4 * (4 * tb * n + 11 * n * n + 4 * n)
    vmem_limit = int(min(max(2 * vmem_need, 32 << 20), 64 << 20))

    out = pl.pallas_call(
        _son_linear_kernel,
        out_shape=jax.ShapeDtypeStruct((B, n), jnp.float32),
        grid_spec=pltpu.PrefetchScalarGridSpec(
            num_scalar_prefetch=1,
            grid=grid,
            in_specs=[pl.BlockSpec((n, n), lambda i, s: (0, 0)),   # a_scaled
                      pl.BlockSpec((1, n), lambda i, s: (0, 0)),   # bias
                      pl.BlockSpec((tb, n), lambda i, s: (i, 0))], # x tile
            out_specs=pl.BlockSpec((tb, n), lambda i, s: (i, 0)),
            scratch_shapes=[pltpu.VMEM((n, n), jnp.float32)]),     # W
        compiler_params=pltpu.CompilerParams(
            dimension_semantics=("arbitrary",),   # scratch W must be visible
            vmem_limit_bytes=vmem_limit),         # to every grid step / core
        cost_estimate=pl.CostEstimate(
            # nominal squaring count of 4 (runtime s is data-dependent)
            flops=int(2 * B * n * n + B * n + 2 * (5 + 4) * n ** 3),
            transcendentals=0,
            bytes_accessed=int((2 * B * n + n * n + n) * 4 + 4)),
    )(s, a_scaled, bias, x)
    return out


if __name__ == "__main__":
    B, N = 8, 32  # small shapes: batch=8, n=32

    key = jax.random.PRNGKey(0)
    k_mat, k_x = jax.random.split(key)

    # deterministic parameter init (stands in for torch.randn(n, n))
    mat = jax.random.normal(k_mat, (N, N), dtype=jnp.float32)
    bias = jnp.zeros((1, N), dtype=jnp.float32)      # torch.zeros(n)
    x = jax.random.normal(k_x, (B, N), dtype=jnp.float32)

    out = son_linear(x, mat, bias)
    out = jax.block_until_ready(out)

    # pure-JAX reference for sanity
    skew_ref = jnp.triu(mat) - jnp.triu(mat).T
    w_ref = jax.scipy.linalg.expm(skew_ref)
    ref = x @ w_ref + bias
    np.testing.assert_allclose(np.asarray(out), np.asarray(ref),
                               rtol=1e-4, atol=1e-4)

    print("KERNEL_OK")
</pallas_src>

<mosaic_0001>
module attributes {stable_mosaic.version = 11 : i64} {
  func.func @_son_linear_kernel(%arg0: i32, %arg1: memref<1xi32, #tpu.memory_space<smem>>, %arg2: memref<32x32xf32, #tpu.memory_space<vmem>>, %arg3: memref<1x32xf32, #tpu.memory_space<vmem>>, %arg4: memref<8x32xf32, #tpu.memory_space<vmem>>, %arg5: memref<8x32xf32, #tpu.memory_space<vmem>>, %arg6: memref<32x32xf32, #tpu.memory_space<vmem>>) attributes {dimension_semantics = [#tpu.dimension_semantics<arbitrary>], iteration_bounds = array<i64: 1>, scalar_prefetch = 1 : i64, scratch_operands = 1 : i64, tpu.core_type = #tpu.core_type<tc>, window_params = [{pipeline_mode = #tpu.pipeline_mode<synchronous>, transform_indices = @transform_0, window_bounds = array<i64: 32, 32>}, {pipeline_mode = #tpu.pipeline_mode<synchronous>, transform_indices = @transform_1, window_bounds = array<i64: 1, 32>}, {transform_indices = @transform_2, window_bounds = array<i64: 8, 32>}, {transform_indices = @transform_3, window_bounds = array<i64: 8, 32>}]} {
    %c0_i32 = arith.constant 0 : i32
    %0 = arith.cmpi eq, %arg0, %c0_i32 : i32
    %1 = arith.extui %0 : i1 to i32
    %c0_i32_0 = arith.constant 0 : i32
    %2 = arith.cmpi ne, %1, %c0_i32_0 : i32
    scf.if %2 {
      %c0_8 = arith.constant 0 : index
      %c0_9 = arith.constant 0 : index
      %10 = vector.load %arg2[%c0_8, %c0_9] : memref<32x32xf32, #tpu.memory_space<vmem>>, vector<32x32xf32>
      %11 = tpu.iota {dimensions = array<i32: 0>} : vector<32x32xi32>
      %12 = tpu.iota {dimensions = array<i32: 1>} : vector<32x32xi32>
      %13 = arith.cmpi eq, %11, %12 : vector<32x32xi32>
      %cst_10 = arith.constant dense<0.000000e+00> : vector<32x32xf32>
      %14 = tpu.matmul %10, %10, %cst_10 {dimension_numbers = #tpu.dot_dimension_numbers<[1], [0], [0], [1], [0, 0, 1, 1], [], []>} : vector<32x32xf32>, vector<32x32xf32>, vector<32x32xf32> -> vector<32x32xf32>
      %cst_11 = arith.constant dense<0.000000e+00> : vector<32x32xf32>
      %15 = tpu.matmul %14, %10, %cst_11 {dimension_numbers = #tpu.dot_dimension_numbers<[1], [0], [0], [1], [0, 0, 1, 1], [], []>} : vector<32x32xf32>, vector<32x32xf32>, vector<32x32xf32> -> vector<32x32xf32>
      %cst_12 = arith.constant dense<0.000000e+00> : vector<32x32xf32>
      %16 = tpu.matmul %14, %14, %cst_12 {dimension_numbers = #tpu.dot_dimension_numbers<[1], [0], [0], [1], [0, 0, 1, 1], [], []>} : vector<32x32xf32>, vector<32x32xf32>, vector<32x32xf32> -> vector<32x32xf32>
      %cst_13 = arith.constant 2.75573188E-6 : f32
      %17 = vector.broadcast %cst_13 : f32 to vector<32x32xf32>
      %18 = arith.mulf %10, %17 : vector<32x32xf32>
      %cst_14 = arith.constant 2.755732E-7 : f32
      %19 = vector.broadcast %cst_14 : f32 to vector<32x32xf32>
      %20 = arith.mulf %14, %19 : vector<32x32xf32>
      %21 = arith.addf %18, %20 : vector<32x32xf32>
      %cst_15 = arith.constant 2.50521079E-8 : f32
      %22 = vector.broadcast %cst_15 : f32 to vector<32x32xf32>
      %23 = arith.mulf %15, %22 : vector<32x32xf32>
      %24 = arith.addf %21, %23 : vector<32x32xf32>
      %cst_16 = arith.constant 2.08767559E-9 : f32
      %25 = vector.broadcast %cst_16 : f32 to vector<32x32xf32>
      %26 = arith.mulf %16, %25 : vector<32x32xf32>
      %27 = arith.addf %24, %26 : vector<32x32xf32>
      %cst_17 = arith.constant 2.48015876E-5 : f32
      %28 = vector.broadcast %cst_17 : f32 to vector<32x32xf32>
      %29 = arith.addf %27, %28 : vector<32x32xf32>
      %30 = arith.select %13, %29, %27 : vector<32x32xi1>, vector<32x32xf32>
      %cst_18 = arith.constant 0.00833333377 : f32
      %31 = vector.broadcast %cst_18 : f32 to vector<32x32xf32>
      %32 = arith.mulf %10, %31 : vector<32x32xf32>
      %cst_19 = arith.constant 0.00138888892 : f32
      %33 = vector.broadcast %cst_19 : f32 to vector<32x32xf32>
      %34 = arith.mulf %14, %33 : vector<32x32xf32>
      %35 = arith.addf %32, %34 : vector<32x32xf32>
      %cst_20 = arith.constant 1.98412701E-4 : f32
      %36 = vector.broadcast %cst_20 : f32 to vector<32x32xf32>
      %37 = arith.mulf %15, %36 : vector<32x32xf32>
      %38 = arith.addf %35, %37 : vector<32x32xf32>
      %cst_21 = arith.constant 0.0416666679 : f32
      %39 = vector.broadcast %cst_21 : f32 to vector<32x32xf32>
      %40 = arith.addf %38, %39 : vector<32x32xf32>
      %41 = arith.select %13, %40, %38 : vector<32x32xi1>, vector<32x32xf32>
      %cst_22 = arith.constant dense<0.000000e+00> : vector<32x32xf32>
      %42 = tpu.matmul %16, %30, %cst_22 {dimension_numbers = #tpu.dot_dimension_numbers<[1], [0], [0], [1], [0, 0, 1, 1], [], []>} : vector<32x32xf32>, vector<32x32xf32>, vector<32x32xf32> -> vector<32x32xf32>
      %43 = arith.addf %41, %42 : vector<32x32xf32>
      %cst_23 = arith.constant 5.000000e-01 : f32
      %44 = vector.broadcast %cst_23 : f32 to vector<32x32xf32>
      %45 = arith.mulf %14, %44 : vector<32x32xf32>
      %46 = arith.addf %10, %45 : vector<32x32xf32>
      %cst_24 = arith.constant 0.166666672 : f32
      %47 = vector.broadcast %cst_24 : f32 to vector<32x32xf32>
      %48 = arith.mulf %15, %47 : vector<32x32xf32>
      %49 = arith.addf %46, %48 : vector<32x32xf32>
      %cst_25 = arith.constant 1.000000e+00 : f32
      %50 = vector.broadcast %cst_25 : f32 to vector<32x32xf32>
      %51 = arith.addf %49, %50 : vector<32x32xf32>
      %52 = arith.select %13, %51, %49 : vector<32x32xi1>, vector<32x32xf32>
      %cst_26 = arith.constant dense<0.000000e+00> : vector<32x32xf32>
      %53 = tpu.matmul %16, %43, %cst_26 {dimension_numbers = #tpu.dot_dimension_numbers<[1], [0], [0], [1], [0, 0, 1, 1], [], []>} : vector<32x32xf32>, vector<32x32xf32>, vector<32x32xf32> -> vector<32x32xf32>
      %54 = arith.addf %52, %53 : vector<32x32xf32>
      %c0_27 = arith.constant 0 : index
      %c0_28 = arith.constant 0 : index
      %55 = vector.load %arg6[%c0_27, %c0_28] : memref<32x32xf32, #tpu.memory_space<vmem>>, vector<32x32xf32>
      tpu.vector_store %arg6[%c0_27, %c0_28], %54 {strides = array<i32>} : memref<32x32xf32, #tpu.memory_space<vmem>>, vector<32x32xf32>,
      %c0_29 = arith.constant 0 : index
      %56 = memref.load %arg1[%c0_29] : memref<1xi32, #tpu.memory_space<smem>>
      %c0_i32_30 = arith.constant 0 : i32
      %57 = arith.subi %56, %c0_i32_30 : i32
      %c1_i32 = arith.constant 1 : i32
      %c1_i32_31 = arith.constant 1 : i32
      %58 = arith.subi %c1_i32, %c1_i32_31 : i32
      %59 = arith.addi %57, %58 : i32
      %c1_i32_32 = arith.constant 1 : i32
      %60 = arith.divsi %59, %c1_i32_32 : i32
      %c1_i32_33 = arith.constant 1 : i32
      %c0_i32_34 = arith.constant 0 : i32
      %c0_i32_35 = arith.constant 0 : i32
      %61 = arith.subi %60, %c0_i32_35 : i32
      %62 = arith.addi %c0_i32_35, %61 : i32
      %c1_i32_36 = arith.constant 1 : i32
      scf.for %arg7 = %c0_i32_35 to %62 step %c1_i32_36  : i32 {
        %63 = arith.muli %arg7, %c1_i32_33 : i32
        %64 = arith.addi %c0_i32_34, %63 : i32
        %c0_37 = arith.constant 0 : index
        %c0_38 = arith.constant 0 : index
        %65 = vector.load %arg6[%c0_37, %c0_38] : memref<32x32xf32, #tpu.memory_space<vmem>>, vector<32x32xf32>
        %c0_39 = arith.constant 0 : index
        %c0_40 = arith.constant 0 : index
        %66 = vector.load %arg6[%c0_39, %c0_40] : memref<32x32xf32, #tpu.memory_space<vmem>>, vector<32x32xf32>
        %cst_41 = arith.constant dense<0.000000e+00> : vector<32x32xf32>
        %67 = tpu.matmul %65, %66, %cst_41 {dimension_numbers = #tpu.dot_dimension_numbers<[1], [0], [0], [1], [0, 0, 1, 1], [], []>} : vector<32x32xf32>, vector<32x32xf32>, vector<32x32xf32> -> vector<32x32xf32>
        %c0_42 = arith.constant 0 : index
        %c0_43 = arith.constant 0 : index
        %68 = vector.load %arg6[%c0_42, %c0_43] : memref<32x32xf32, #tpu.memory_space<vmem>>, vector<32x32xf32>
        tpu.vector_store %arg6[%c0_42, %c0_43], %67 {strides = array<i32>} : memref<32x32xf32, #tpu.memory_space<vmem>>, vector<32x32xf32>,
      }
    } else {
    }
    %c0 = arith.constant 0 : index
    %c0_1 = arith.constant 0 : index
    %3 = vector.load %arg4[%c0, %c0_1] : memref<8x32xf32, #tpu.memory_space<vmem>>, vector<8x32xf32>
    %c0_2 = arith.constant 0 : index
    %c0_3 = arith.constant 0 : index
    %4 = vector.load %arg6[%c0_2, %c0_3] : memref<32x32xf32, #tpu.memory_space<vmem>>, vector<32x32xf32>
    %cst = arith.constant dense<0.000000e+00> : vector<8x32xf32>
    %5 = tpu.matmul %3, %4, %cst {dimension_numbers = #tpu.dot_dimension_numbers<[1], [0], [0], [1], [0, 0, 1, 1], [], []>} : vector<8x32xf32>, vector<32x32xf32>, vector<8x32xf32> -> vector<8x32xf32>
    %c0_4 = arith.constant 0 : index
    %c0_5 = arith.constant 0 : index
    %6 = vector.load %arg3[%c0_4, %c0_5] : memref<1x32xf32, #tpu.memory_space<vmem>>, vector<1x32xf32>
    %7 = vector.broadcast %6 : vector<1x32xf32> to vector<8x32xf32>
    %8 = arith.addf %5, %7 : vector<8x32xf32>
    %c0_6 = arith.constant 0 : index
    %c0_7 = arith.constant 0 : index
    %9 = vector.load %arg5[%c0_6, %c0_7] : memref<8x32xf32, #tpu.memory_space<vmem>>, vector<8x32xf32>
    tpu.vector_store %arg5[%c0_6, %c0_7], %8 {strides = array<i32>} : memref<8x32xf32, #tpu.memory_space<vmem>>, vector<8x32xf32>,
    return
  }
  func.func @transform_0(%arg0: i32, %arg1: memref<1xi32, #tpu.memory_space<smem>>) -> (i32, i32) {
    %c0_i32 = arith.constant 0 : i32
    %c0_i32_0 = arith.constant 0 : i32
    %c0_i32_1 = arith.constant 0 : i32
    return %c0_i32, %c0_i32_0 : i32, i32
  }
  func.func @transform_1(%arg0: i32, %arg1: memref<1xi32, #tpu.memory_space<smem>>) -> (i32, i32) {
    %c0_i32 = arith.constant 0 : i32
    %c0_i32_0 = arith.constant 0 : i32
    %c0_i32_1 = arith.constant 0 : i32
    return %c0_i32, %c0_i32_0 : i32, i32
  }
  func.func @transform_2(%arg0: i32, %arg1: memref<1xi32, #tpu.memory_space<smem>>) -> (i32, i32) {
    %c0_i32 = arith.constant 0 : i32
    %c0_i32_0 = arith.constant 0 : i32
    return %arg0, %c0_i32 : i32, i32
  }
  func.func @transform_3(%arg0: i32, %arg1: memref<1xi32, #tpu.memory_space<smem>>) -> (i32, i32) {
    %c0_i32 = arith.constant 0 : i32
    %c0_i32_0 = arith.constant 0 : i32
    return %arg0, %c0_i32 : i32, i32
  }
}

</mosaic_0001>

<bundles_post_ra>
// kernel: son_linear.1
= control target key start
LH: loop header
LB: loop body
LE: loop exit
PB: predicated region body
PF: predicated region fallthrough
CT: control target
= control target key end

     0   :  { %10 = vsyncpa [#allocation6], 0  ;;  %vm36_vm0 = vcmask 261120   ;;  %v25_v8 = vlaneseq  ;;  %s1268_s0 = inlined_call_operand.<no memory space> [shape: s32[1], index: 0, kind: input, shape index: {}]   ;;  %s1269_s1 = inlined_call_operand.vmem [shape: f32[32,32], index: 1, kind: input, shape index: {}]   ;;  %s1270_s2 = inlined_call_operand.vmem [shape: f32[1,32], index: 2, kind: input, shape index: {}]   ;;  %s1271_s3 = inlined_call_operand.vmem [shape: f32[8,32], index: 3, kind: input, shape index: {}]   ;;  %s1272_s4 = inlined_call_operand.hbm [shape: f32[8,32], index: 4, kind: output, shape index: {}]  }
   0x1   :  { %v1079_v0 = vld [vmem:[%s1269_s1 + $0x18] sm:$0xff]  ;;  %v1084_v1 = vld [vmem:[%s1269_s1 + $0x10] sm:$0xff]  ;;  %v1090_v2 = vld [vmem:[%s1269_s1] sm:$0xff]  ;;  %p836_p0 = scmp.le.s32.totalorder %s1268_s0, 0 }
   0x2   :  { %896 = vmatprep.subr.mxu0 %v1079_v0  ;;  %910 = vmatprep.subr.mxu1 %v1079_v0  ;;  %v22_v3 = vld [vmem:[%s1269_s1 + $0x8] sm:$0xff]  ;;  %v1127_v12 = vshrl.u32 %v25_v8, 7  ;;  %v1130_v14 = vmul.f32 2.7557319e-06, %v1090_v2  ;;  %v352_v15 = vmul.f32 0.008333334, %v1090_v2 }
   0x3   :  { %897 = vmatpush3.msra.mxu0 %v1079_v0  ;;  %904 = vmatprep.mubr.msk.f32.mxu0 %vm36_vm0, %v1090_v2  ;;  %v353_v9 = vmul.f32 0.008333334, %v22_v3  ;;  %v317_v13 = vmul.f32 2.7557319e-06, %v22_v3  ;;  %v355_v18 = vmul.f32 0.008333334, %v1079_v0 }
   0x4   :  { %898 = vmatprep.subr.mxu0 %v1084_v1  ;;  %911 = vmatpush3.msra.mxu1 %v1079_v0  ;;  %v1134_v26 = vand.u32 127, %v25_v8  ;;  %v1137_v27 = vadd.s32 8, %v1127_v12  ;;  %v319_v30 = vmul.f32 2.7557319e-06, %v1079_v0  ;;  %v318_v31 = vmul.f32 2.7557319e-06, %v1084_v1 }
   0x5   :  { %899 = vmatpush3.msra.mxu0 %v1084_v1  ;;  %912 = vmatprep.subr.mxu1 %v1084_v1  ;;  %v29_v40 = vadd.s32 24, %v1127_v12  ;;  %s1238_s24 = smov (!%p836_p0), 0  }
   0x6   :  { %900 = vmatprep.subr.mxu0 %v22_v3  ;;  %913 = vmatpush3.msra.mxu1 %v1084_v1  ;;  %vm33_vm1 = vcmp.eq.s32.totalorder %v1137_v27, %v1134_v26  ;;  %vm32_vm2 = vcmp.eq.s32.totalorder %v1127_v12, %v1134_v26  ;;  %v354_v27 = vmul.f32 0.008333334, %v1084_v1 }
   0x7   :  { %901 = vmatpush3.msra.mxu0 %v22_v3  ;;  %914 = vmatprep.subr.mxu1 %v22_v3  ;;  %vm35_vm3 = vcmp.eq.s32.totalorder %v29_v40, %v1134_v26 }
   0x8   :  { %902 = vmatprep.subr.mxu0 %v1090_v2  ;;  %915 = vmatpush3.msra.mxu1 %v22_v3 }
   0x9   :  { %903 = vmatpush3.msra.mxu0 %v1090_v2  ;;  %916 = vmatprep.subr.mxu1 %v1090_v2 }
   0xa   :  { %905 = vmatmul.mubr.msk.f32.vlgmr.msra.gmra.mxu0 %vm36_vm0, %v22_v3  ;;  %917 = vmatpush3.msra.mxu1 %v1090_v2 }
   0xb   :  { %907 = vmatprep.mubr.msk.f32.mxu0 %vm36_vm0, %v1084_v1 }
   0xe   :  { %908 = vmatmul.mubr.msk.f32.gmra.mxu0 %vm36_vm0, %v1079_v0 }
  0xca   :  { %v906_v4 = vpop.f32.mrf.mxu0 }
  0xcb   :  { %v357_v10 = vmul.f32 0.0013888889, %v906_v4  ;;  %v482_v11 = vmul.f32 0.5, %v906_v4  ;;  %v321_v28 = vmul.f32 2.755732e-07, %v906_v4 }
  0xcc   :  { %v115_v5 = vpop.f32.mrf.mxu0 }
  0xcd   :  { %918 = vmatprep.mubr.msk.f32.mxu1 %vm36_vm0, %v115_v5  ;;  %932 = vmatprep.mubr.msk.f32.mxu0 %vm36_vm0, %v115_v5  ;;  %v356_v16 = vmul.f32 0.0013888889, %v115_v5  ;;  %v481_v17 = vmul.f32 0.5, %v115_v5  ;;  %v361_v20 = vadd.f32 %v357_v10, %v353_v9  ;;  %v486_v21 = vadd.f32 %v482_v11, %v22_v3 }
  0xce   :  { %v909_v6 = vpop.f32.mrf.mxu0  ;;  %919 = vmatmul.mubr.msk.f32.vlgmr.msra.gmra.mxu1 %vm36_vm0, %v906_v4  ;;  %v320_v48 = vmul.f32 2.755732e-07, %v115_v5 }
  0xcf   :  { %924 = vmatprep.subr.mxu0 %v909_v6  ;;  %v359_v22 = vmul.f32 0.0013888889, %v909_v6  ;;  %v484_v23 = vmul.f32 0.5, %v909_v6  ;;  %v360_v34 = vadd.f32 %v356_v16, %v352_v15  ;;  %v485_v35 = vadd.f32 %v481_v17, %v1090_v2 }
  0xd0   :  { %v1116_v7 = vpop.f32.mrf.mxu0  ;;  %925 = vmatpush3.msra.mxu0 %v909_v6  ;;  %v323_v51 = vmul.f32 2.755732e-07, %v909_v6  ;;  %v324_v10 = vadd.f32 %v320_v48, %v1130_v14  ;;  %v1189_v14 = vadd.s32 16, %v1127_v12 }
  0xd1   :  { %921 = vmatprep.mubr.msk.f32.mxu1 %vm36_vm0, %v1116_v7  ;;  %926 = vmatprep.subr.mxu0 %v1116_v7  ;;  %v363_v39 = vadd.f32 %v359_v22, %v355_v18  ;;  %v488_v42 = vadd.f32 %v484_v23, %v1079_v0  ;;  %v322_v55 = vmul.f32 2.755732e-07, %v1116_v7 }
  0xd2   :  { %922 = vmatmul.mubr.msk.f32.gmra.mxu1 %vm36_vm0, %v909_v6  ;;  %927 = vmatpush3.msra.mxu0 %v1116_v7  ;;  %vm34_vm4 = vcmp.eq.s32.totalorder %v1189_v14, %v1134_v26 }
  0xd3   :  { %928 = vmatprep.subr.mxu0 %v906_v4  ;;  %v326_v11 = vadd.f32 %v322_v55, %v318_v31 }
  0xd4   :  { %929 = vmatpush3.msra.mxu0 %v906_v4 }
  0xd5   :  { %930 = vmatprep.subr.mxu0 %v115_v5 }
  0xd6   :  { %931 = vmatpush3.msra.mxu0 %v115_v5  ;;  %v325_v5 = vadd.f32 %v321_v28, %v317_v13 }
  0xd7   :  { %933 = vmatmul.mubr.msk.f32.vlgmr.msra.gmra.mxu0 %vm36_vm0, %v906_v4 }
  0xd8   :  { %935 = vmatprep.mubr.msk.f32.mxu0 %vm36_vm0, %v1116_v7 }
  0xdb   :  { %936 = vmatmul.mubr.msk.f32.gmra.mxu0 %vm36_vm0, %v909_v6  ;;  %v327_v6 = vadd.f32 %v323_v51, %v319_v30  ;;  %v483_v51 = vmul.f32 0.5, %v1116_v7 }
 0x18e   :  { %v920_v19 = vpop.f32.mrf.mxu1 }
 0x18f   :  { %v365_v24 = vmul.f32 0.0001984127, %v920_v19  ;;  %v490_v25 = vmul.f32 0.16666667, %v920_v19  ;;  %v329_v60 = vmul.f32 2.5052108e-08, %v920_v19 }
 0x190   :  { %v212_v29 = vpop.f32.mrf.mxu1 }
 0x191   :  { %v369_v32 = vadd.f32 %v365_v24, %v361_v20  ;;  %v494_v33 = vadd.f32 %v490_v25, %v486_v21  ;;  %v364_v36 = vmul.f32 0.0001984127, %v212_v29  ;;  %v489_v37 = vmul.f32 0.16666667, %v212_v29 }
 0x192   :  { %v923_v38 = vpop.f32.mrf.mxu1  ;;  %v328_v63 = vmul.f32 2.5052108e-08, %v212_v29  ;;  %v333_v13 = vadd.f32 %v329_v60, %v325_v5 }
 0x193   :  { %v367_v41 = vmul.f32 0.0001984127, %v923_v38  ;;  %v492_v43 = vmul.f32 0.16666667, %v923_v38  ;;  %v368_v44 = vadd.f32 %v364_v36, %v360_v34  ;;  %v493_v45 = vadd.f32 %v489_v37, %v485_v35 }
 0x194   :  { %v373_v46 = vadd.f32 0.041666668, %v369_v32  ;;  %v498_v47 = vadd.f32 1.0, %v494_v33  ;;  %v1154_v54 = vpop.f32.mrf.mxu1  ;;  %v331_v61 = vmul.f32 2.5052108e-08, %v923_v38  ;;  %v332_v20 = vadd.f32 %v328_v63, %v324_v10 }
 0x195   :  { %v371_v49 = vadd.f32 %v367_v41, %v363_v39  ;;  %v496_v50 = vadd.f32 %v492_v43, %v488_v42  ;;  %v372_v53 = vadd.f32 0.041666668, %v368_v44  ;;  %v497_v4 = vadd.f32 1.0, %v493_v45 }
 0x196   :  { %v1152_v52 = vsel %vm33_vm1, %v373_v46, %v369_v32  ;;  %v1162_v58 = vsel %vm33_vm1, %v498_v47, %v494_v33  ;;  %v330_v8 = vmul.f32 2.5052108e-08, %v1154_v54  ;;  %v335_v17 = vadd.f32 %v331_v61, %v327_v6 }
 0x197   :  { %v1157_v56 = vpop.f32.mrf.mxu0  ;;  %v375_v57 = vadd.f32 0.041666668, %v371_v49  ;;  %v500_v59 = vadd.f32 1.0, %v496_v50  ;;  %v1167_v62 = vsel %vm32_vm2, %v372_v53, %v368_v44  ;;  %v1185_v16 = vsel %vm32_vm2, %v497_v4, %v493_v45 }
 0x198   :  { %v337_v9 = vmul.f32 2.0876756e-09, %v1157_v56  ;;  %v334_v22 = vadd.f32 %v330_v8, %v326_v11  ;;  %v358_v38 = vmul.f32 0.0013888889, %v1116_v7  ;;  %v366_v39 = vmul.f32 0.0001984127, %v1154_v54 }
 0x199   :  { %v297_v0 = vpop.f32.mrf.mxu0  ;;  %v379_v2 = vsel %vm35_vm3, %v375_v57, %v371_v49  ;;  %v1173_v3 = vsel %vm35_vm3, %v500_v59, %v496_v50  ;;  %v487_v53 = vadd.f32 %v483_v51, %v1084_v1 }
 0x19a   :  { %946 = vmatprep.mubr.msk.f32.mxu1 %vm36_vm0, %v297_v0  ;;  %960 = vmatprep.mubr.msk.f32.mxu0 %vm36_vm0, %v297_v0  ;;  %v336_v18 = vmul.f32 2.0876756e-09, %v297_v0  ;;  %v341_v23 = vadd.f32 %v337_v9, %v333_v13  ;;  %v362_v12 = vadd.f32 %v358_v38, %v354_v27 }
 0x19b   :  { %v1180_v15 = vpop.f32.mrf.mxu0 }
 0x19c   :  { %v339_v19 = vmul.f32 2.0876756e-09, %v1180_v15  ;;  %v340_v28 = vadd.f32 %v336_v18, %v332_v20  ;;  %v345_v33 = vadd.f32 2.4801588e-05, %v341_v23  ;;  %v370_v40 = vadd.f32 %v366_v39, %v362_v12 }
 0x19d   :  { %v307_v21 = vpop.f32.mrf.mxu0 }
 0x19e   :  { %v343_v24 = vadd.f32 %v339_v19, %v335_v17  ;;  %v338_v25 = vmul.f32 2.0876756e-09, %v307_v21  ;;  %v344_v35 = vadd.f32 2.4801588e-05, %v340_v28  ;;  %v349_v36 = vsel %vm33_vm1, %v345_v33, %v341_v23 }
 0x19f   :  { %v374_v43 = vadd.f32 0.041666668, %v370_v40 }
 0x1a0   :  { %v342_v29 = vadd.f32 %v338_v25, %v334_v22  ;;  %v347_v30 = vadd.f32 2.4801588e-05, %v343_v24  ;;  %v348_v37 = vsel %vm32_vm2, %v344_v35, %v340_v28 }
 0x1a1   :  { %v378_v46 = vsel %vm34_vm4, %v374_v43, %v370_v40 }
 0x1a2   :  { %v351_v31 = vsel %vm35_vm3, %v347_v30, %v343_v24  ;;  %v346_v32 = vadd.f32 2.4801588e-05, %v342_v29 }
 0x1a3   :  { %938 = vmatprep.subr.mxu1 %v351_v31 }
 0x1a4   :  { %939 = vmatpush3.msra.mxu1 %v351_v31  ;;  %v350_v34 = vsel %vm34_vm4, %v346_v32, %v342_v29 }
 0x1a5   :  { %940 = vmatprep.subr.mxu1 %v350_v34 }
 0x1a6   :  { %941 = vmatpush3.msra.mxu1 %v350_v34 }
 0x1a7   :  { %942 = vmatprep.subr.mxu1 %v349_v36 }
 0x1a8   :  { %943 = vmatpush3.msra.mxu1 %v349_v36 }
 0x1a9   :  { %944 = vmatprep.subr.mxu1 %v348_v37 }
 0x1aa   :  { %945 = vmatpush3.msra.mxu1 %v348_v37 }
 0x1ab   :  { %947 = vmatmul.mubr.msk.f32.vlgmr.msra.gmra.mxu1 %vm36_vm0, %v1157_v56 }
 0x1ac   :  { %949 = vmatprep.mubr.msk.f32.mxu1 %vm36_vm0, %v307_v21 }
 0x1af   :  { %950 = vmatmul.mubr.msk.f32.gmra.mxu1 %vm36_vm0, %v1180_v15 }
 0x1b0   :  { %963 = vmatprep.mubr.msk.f32.mxu1 %vm36_vm0, %v307_v21 }
 0x26b   :  { %v948_v41 = vpop.f32.mrf.mxu1 }
 0x26c   :  { %v478_v49 = vadd.f32 %v948_v41, %v1152_v52  ;;  %v491_v52 = vmul.f32 0.16666667, %v1154_v54 }
 0x26d   :  { %v458_v42 = vpop.f32.mrf.mxu1 }
 0x26e   :  { %v477_v50 = vadd.f32 %v458_v42, %v1167_v62  ;;  %v495_v55 = vadd.f32 %v491_v52, %v487_v53 }
 0x26f   :  { %v951_v44 = vpop.f32.mrf.mxu1 }
 0x270   :  { %v480_v45 = vadd.f32 %v951_v44, %v379_v2  ;;  %v499_v57 = vadd.f32 1.0, %v495_v55 }
 0x271   :  { %v468_v47 = vpop.f32.mrf.mxu1 }
 0x272   :  { %v479_v48 = vadd.f32 %v468_v47, %v378_v46  ;;  %952 = vmatprep.subr.mxu0 %v480_v45  ;;  %991 = vmatprep.subr.mxu1 %v480_v45 }
 0x273   :  { %953 = vmatpush3.msra.mxu0 %v480_v45  ;;  %995 = vmatpush3.msra.mxu1 %v480_v45 }
 0x274   :  { %954 = vmatprep.subr.mxu0 %v479_v48  ;;  %992 = vmatprep.subr.mxu1 %v479_v48 }
 0x275   :  { %955 = vmatpush3.msra.mxu0 %v479_v48  ;;  %996 = vmatpush3.msra.mxu1 %v479_v48 }
 0x276   :  { %956 = vmatprep.subr.mxu0 %v478_v49  ;;  %993 = vmatprep.subr.mxu1 %v478_v49 }
 0x277   :  { %957 = vmatpush3.msra.mxu0 %v478_v49  ;;  %997 = vmatpush3.msra.mxu1 %v478_v49 }
 0x278   :  { %958 = vmatprep.subr.mxu0 %v477_v50  ;;  %994 = vmatprep.subr.mxu1 %v477_v50 }
 0x279   :  { %959 = vmatpush3.msra.mxu0 %v477_v50  ;;  %998 = vmatpush3.msra.mxu1 %v477_v50 }
 0x27a   :  { %961 = vmatmul.mubr.msk.f32.vlgmr.msra.gmra.mxu0 %vm36_vm0, %v1157_v56  ;;  %964 = vmatmul.mubr.msk.f32.vlgmr.msra.gmra.mxu1 %vm36_vm0, %v1180_v15  ;;  %v503_v56 = vsel %vm34_vm4, %v499_v57, %v495_v55 }
 0x33a   :  { %v962_v59 = vpop.f32.mrf.mxu0  ;;  %v965_v60 = vpop.f32.mrf.mxu1 }
 0x33b   :  { %v591_v61 = vadd.f32 %v962_v59, %v1162_v58  ;;  %v593_v62 = vadd.f32 %v965_v60, %v1173_v3  ;;  %813 = sbr.rel (%p836_p0) target bundleno = 1042 (0x412), region = 37 }
 0x33c   :  { %v571_v63 = vpop.f32.mrf.mxu0  ;;  %v581_v0 = vpop.f32.mrf.mxu1 }
 0x33d   :  { %595 = vst.msk [vmem:[#allocation2 + $0x8] sm:$0xff] %vm36_vm0, %v591_v61  ;;  %597 = vst.msk [vmem:[#allocation2 + $0x18] sm:$0xff] %vm36_vm0, %v593_v62  ;;  %v590_v1 = vadd.f32 %v571_v63, %v1185_v16  ;;  %v592_v7 = vadd.f32 %v581_v0, %v503_v56 }
 0x33f   :  { %594 = vst.msk [vmem:[#allocation2] sm:$0xff] %vm36_vm0, %v590_v1  ;;  %596 = vst.msk [vmem:[#allocation2 + $0x10] sm:$0xff] %vm36_vm0, %v592_v7 }
 0x340 LB: > { %s602_s24 = sadd.s32 1, %s1046_s24   ;;  %s1046_s24 = sphi %s1238_s24, %s602_s24  }
 0x341   : > { %p601_p1 = scmp.ge.s32.totalorder %s602_s24, %s1268_s0 }
 0x344   : > { %v608_v26 = vld [vmem:[#allocation2 + $0x18] sm:$0xff]  ;;  %v606_v58 = vld [vmem:[#allocation2 + $0x8] sm:$0xff] }
 0x345   : > { %966 = vmatprep.subr.mxu0 %v608_v26  ;;  %999 = vmatprep.subr.mxu1 %v608_v26 }
 0x346   : > { %v607_v54 = vld [vmem:[#allocation2 + $0x10] sm:$0xff]  ;;  %967 = vmatpush3.msra.mxu0 %v608_v26  ;;  %1003 = vmatpush3.msra.mxu1 %v608_v26  ;;  %v605_v2 = vld [vmem:[#allocation2] sm:$0xff] }
 0x347   : > { %968 = vmatprep.subr.mxu0 %v607_v54  ;;  %1000 = vmatprep.subr.mxu1 %v607_v54 }
 0x348   : > { %969 = vmatpush3.msra.mxu0 %v607_v54  ;;  %1004 = vmatpush3.msra.mxu1 %v607_v54 }
 0x349   : > { %970 = vmatprep.subr.mxu0 %v606_v58  ;;  %1001 = vmatprep.subr.mxu1 %v606_v58 }
 0x34a   : > { %971 = vmatpush3.msra.mxu0 %v606_v58  ;;  %1005 = vmatpush3.msra.mxu1 %v606_v58 }
 0x34b   : > { %972 = vmatprep.subr.mxu0 %v605_v2  ;;  %1002 = vmatprep.subr.mxu1 %v605_v2 }
 0x34c   : > { %973 = vmatpush3.msra.mxu0 %v605_v2  ;;  %1006 = vmatpush3.msra.mxu1 %v605_v2 }
 0x34d   : > { %974 = vmatprep.mubr.msk.f32.mxu0 %vm36_vm0, %v605_v2  ;;  %977 = vmatprep.mubr.msk.f32.mxu1 %vm36_vm0, %v607_v54 }
 0x34e   : > { %975 = vmatmul.mubr.msk.f32.vlgmr.msra.gmra.mxu0 %vm36_vm0, %v606_v58  ;;  %978 = vmatmul.mubr.msk.f32.vlgmr.msra.gmra.mxu1 %vm36_vm0, %v608_v26 }
 0x40d   :  { %604 = sbr.rel (!%p601_p1) target bundleno = 832 (0x340), region = 43 }
 0x40e   : > { %v976_v3 = vpop.f32.mrf.mxu0  ;;  %v979_v4 = vpop.f32.mrf.mxu1 }
 0x40f   : > { %707 = vst.msk [vmem:[#allocation2 + $0x8] sm:$0xff] %vm36_vm0, %v976_v3  ;;  %709 = vst.msk [vmem:[#allocation2 + $0x18] sm:$0xff] %vm36_vm0, %v979_v4 }
 0x410   : > { %v687_v5 = vpop.f32.mrf.mxu0  ;;  %v697_v6 = vpop.f32.mrf.mxu1 }
 0x411   : > { %706 = vst.msk [vmem:[#allocation2] sm:$0xff] %vm36_vm0, %v687_v5  ;;  %708 = vst.msk [vmem:[#allocation2 + $0x10] sm:$0xff] %vm36_vm0, %v697_v6 }
 0x412 PF:  { %v1048_v9 = vmov 0.0   ;;  %vm1049_vm5 = vmmov 0   ;;  %v710_v16 = vld [vmem:[%s1271_s3] sm:$0xff]  ;;  %s1050_s30 = smov [#allocation5]  }
 0x413   :  { %980 = vmatprep.subr.mxu0 %v1048_v9  ;;  %988 = vmatprep.mubr.msk.f32.mxu0 %vm1049_vm5, %v1048_v9  ;;  %v841_v13 = vld [vmem:[%s1270_s2] ss:$0 sm:$0xff]  ;;  %s803_s5 = sshll.u32 %s1050_s30, 4  ;;  %s804_s5 = int_to_ptr.vmem [resolvable:$true] %s803_s5 }
 0x414   :  { %s1018_s6 = scalar_lea.vmem %s804_s5, 128  ;;  %p1023_p3 = scmp.lt.s32.totalorder %s804_s5, %s804_s5 }
 0x415   :  { %p1019_p2 = scmp.ne.s32.totalorder %s804_s5, %s1018_s6  ;;  %p1024_p4 = scmp.lt.s32.totalorder %s1018_s6, %s1018_s6 }
 0x416   :  { %v714_v8 = vld [vmem:[#allocation2 + $0x18] sm:$0xff]  ;;  %v712_v11 = vld [vmem:[#allocation2 + $0x8] sm:$0xff] }
 0x417   :  { %981 = vmatpush3.msra.mxu0 %v714_v8  ;;  %p1025_p5 = por %p1024_p4, %p1023_p3 }
 0x418   :  { %v713_v10 = vld [vmem:[#allocation2 + $0x10] sm:$0xff]  ;;  %982 = vmatprep.subr.mxu0 %v1048_v9  ;;  %v711_v15 = vld [vmem:[#allocation2] sm:$0xff] }
 0x419   :  { %983 = vmatpush3.msra.mxu0 %v713_v10  ;;  %p1026_p6 = pnand %p1025_p5, %p1019_p2 }
 0x41a   :  { %984 = vmatprep.subr.mxu0 %v1048_v9 }
 0x41b   :  { %985 = vmatpush3.msra.mxu0 %v712_v11 }
 0x41c   :  { %986 = vmatprep.subr.mxu0 %v1048_v9 }
 0x41d   :  { %987 = vmatpush3.msra.mxu0 %v711_v15 }
 0x41e   :  { %989 = vmatmul.mubr.msk.f32.vlgmr.msra.gmra.mxu0 %vm36_vm0, %v710_v16 }
 0x4de   :  { %v792_v17 = vpop.f32.mrf.mxu0 }
 0x4df   :  { %v793_v18 = vadd.f32 %v841_v13, %v792_v17 }
 0x4e0   :  { %v990_v19 = vpop.f32.mrf.mxu0 }
 0x4e1   :  { %796 = vst.msk [vmem:[#allocation5] sm:$0xff] %vm36_vm0, %v793_v18 }
 0x4e2   :  { %1029 = shalt.err (!%p1026_p6)
}
 0x4e3   :  { %806 = dma.vmem_to_hbm [thread:$0]  %s804_s5, 128, %s1272_s4, [#allocation6]  }
 0x4e4   :  { %1042 = dma.done.wait [#allocation6], 128  }
 0x4e5   :  { %1043 = vsyncadd [#allocation6], 4294967168 }
 0x4e6   :  { %810 = vsyncpa [#allocation6], 1 }

</bundles_post_ra>
